<compile_context>
chip_gen: v7x
topology: tpu7x:2x2x1
jax: 0.10.0
libtpu: 0.0.40
codegen_flags: <defaults>
</compile_context>

<pallas_src>
import functools

import jax
import jax.numpy as jnp
from jax.experimental import pallas as pl
from jax.experimental.pallas import tpu as pltpu

EPS = 1e-5          # nn.BatchNorm2d default eps
NEG_SLOPE = 0.01    # nn.LeakyReLU default negative_slope


def _leaky(t):
    # LeakyReLU as a single VALU max (review micro-opt) instead of cmp+select.
    return jnp.maximum(t, NEG_SLOPE * t)


# ---------------------------------------------------------------------------
# Pass 1: conv1 (3 banded matmuls) + BN1 partial statistics.
# One batch element per grid step ("parallel").
# ---------------------------------------------------------------------------
def _conv1_stats_kernel(xp_ref, m_ref, b_ref, y_ref, s_ref, q_ref):
    # xp_ref: (H+2, W*Cin) bf16  height-padded, lane-packed input
    # m_ref : (3, W*Cin, W*Cp) bf16 band matrices (width padding folded in)
    # b_ref : (1, W*Cp) f32 packed bias
    # y_ref : (H, W*Cp) f32 conv1 output;  s_ref/q_ref: (1, W*Cp) partials
    H = y_ref.shape[0]
    # One cheap unpack to f32 so the ky-shifted row slices stay on the proven
    # 32-bit slice path; re-rounding to bf16 at the dot is exact (values came
    # from bf16 HBM), so the DMA savings are kept.
    x = xp_ref[...].astype(jnp.float32)
    acc = jnp.dot(x[0:H].astype(jnp.bfloat16), m_ref[0],
                  preferred_element_type=jnp.float32)
    acc = acc + jnp.dot(x[1:H + 1].astype(jnp.bfloat16), m_ref[1],
                        preferred_element_type=jnp.float32)
    acc = acc + jnp.dot(x[2:H + 2].astype(jnp.bfloat16), m_ref[2],
                        preferred_element_type=jnp.float32)
    y = acc + b_ref[...]
    y_ref[...] = y
    s_ref[...] = jnp.sum(y, axis=0, keepdims=True)        # sublane (XLU) reduce
    q_ref[...] = jnp.sum(y * y, axis=0, keepdims=True)


# ---------------------------------------------------------------------------
# Pass 2: BN1 normalize (precomputed scale/shift) + LeakyReLU + conv2 + BN2
# partial statistics.
# ---------------------------------------------------------------------------
def _bn1_act_conv2_stats_kernel(y1_ref, sc_ref, sh_ref, m_ref, b_ref,
                                z_ref, s_ref, q_ref):
    # y1_ref: (H, W*Cp) f32; sc/sh: (1, W*Cp) f32; m_ref: (3, W*Cp, W*Cp) bf16
    H, WC = y1_ref.shape
    a = _leaky(y1_ref[...] * sc_ref[...] + sh_ref[...])    # f32 VPU math (v5e-safe)
    # Height zero-padding only (width padding is inside the band matrices);
    # second-minor-dim concat with size-1 zero rows, a proven-to-lower pattern.
    zrow = jnp.zeros((1, WC), jnp.float32)
    ap = jnp.concatenate([zrow, a, zrow], axis=0)          # (H+2, W*Cp)
    acc = jnp.dot(ap[0:H].astype(jnp.bfloat16), m_ref[0],
                  preferred_element_type=jnp.float32)
    acc = acc + jnp.dot(ap[1:H + 1].astype(jnp.bfloat16), m_ref[1],
                        preferred_element_type=jnp.float32)
    acc = acc + jnp.dot(ap[2:H + 2].astype(jnp.bfloat16), m_ref[2],
                        preferred_element_type=jnp.float32)
    z = acc + b_ref[...]
    z_ref[...] = z
    s_ref[...] = jnp.sum(z, axis=0, keepdims=True)
    q_ref[...] = jnp.sum(z * z, axis=0, keepdims=True)


# ---------------------------------------------------------------------------
# Pass 3: BN2 affine (precomputed scale/shift) + optional residual + LeakyReLU.
# ---------------------------------------------------------------------------
def _bn2_res_act_kernel(z_ref, sc_ref, sh_ref, *rest, skip):
    if skip:
        res_ref, o_ref = rest
    else:
        (o_ref,) = rest
    z = z_ref[...] * sc_ref[...] + sh_ref[...]
    if skip:
        z = z + res_ref[...]                               # un-rounded f32 residual
    o_ref[...] = _leaky(z)


# ---------------------------------------------------------------------------
# Wrapper-side operand preparation (all tiny, done once in XLA).
# ---------------------------------------------------------------------------
def _band_weights(w_oihw, W):
    """OIHW (Cout, Cin, 3, 3) -> (3, W*Cin, W*Cout) bf16 width-banded matrices.

    M[ky, wi*Cin+ci, wo*Cout+co] = w[co, ci, ky, wi-wo+1] for 0 <= wi-wo+1 < 3,
    else 0.  Out-of-range columns are simply absent, which reproduces Conv2d's
    zero padding along the width direction exactly.
    """
    Cout, Cin = w_oihw.shape[0], w_oihw.shape[1]
    wi = jnp.arange(W)[:, None]
    wo = jnp.arange(W)[None, :]
    kx = wi - wo + 1                                       # (W, W)
    valid = (kx >= 0) & (kx <= 2)
    kxc = jnp.clip(kx, 0, 2)
    wk = jnp.transpose(w_oihw.astype(jnp.float32), (2, 3, 1, 0))   # (ky,kx,Cin,Cout)
    t = jnp.where(valid[None, :, :, None, None], wk[:, kxc], 0.0)  # (3,W,W,Cin,Cout)
    t = jnp.transpose(t, (0, 1, 3, 2, 4))                  # (ky, wi, ci, wo, co)
    return t.reshape(3, W * Cin, W * Cout).astype(jnp.bfloat16)


def _pack_per_channel(v, W):
    """(C,) -> (1, W*C) so that packed[0, w*C + c] == v[c] (lane-dense layout)."""
    return jnp.tile(v.astype(jnp.float32), W).reshape(1, -1)


def _vmem_limit_bytes():
    # Per-generation VMEM budget (review): <= half the physical VMEM of the
    # current generation instead of a hard-coded 48 MiB; conservative fallback.
    try:
        cap = int(pltpu.get_tpu_info().vmem_capacity_bytes)
    except Exception:
        cap = 64 * 1024 * 1024            # v7x per-TensorCore physical VMEM
    return max(16 * 1024 * 1024, min(cap // 2, 64 * 1024 * 1024))


# ---------------------------------------------------------------------------
# Public wrapper (PyTorch NCHW / OIHW at the boundary).
# ---------------------------------------------------------------------------
@functools.partial(jax.jit, static_argnames=("expansion",))
def res_layer_2d(x_nchw, w1, b1, g1, be1, w2, b2, g2, be2, *, expansion=4):
    """x: (N, inplanes, H, W); conv weights OIHW; b/g/be: (planes,).
    Returns (N, planes, H, W)."""
    N, Cin, H, W = x_nchw.shape
    Cp = w1.shape[0]
    skip = (Cin == Cp * expansion)
    if skip and Cin != Cp:
        raise ValueError("residual add requires inplanes == planes")

    WCin, WCp = W * Cin, W * Cp

    # NHWC, lane-packed (H, W*C) slabs; height-only zero pad (width padding is
    # folded into the band matrices).  Input DMA'd as bf16 (halved bytes).
    x_nhwc = jnp.transpose(x_nchw, (0, 2, 3, 1)).astype(jnp.float32)
    xp_packed = jnp.pad(x_nhwc, ((0, 0), (1, 1), (0, 0), (0, 0))) \
                   .reshape(N, H + 2, WCin).astype(jnp.bfloat16)

    m1 = _band_weights(w1, W)              # (3, W*Cin, W*Cp) bf16
    m2 = _band_weights(w2, W)              # (3, W*Cp,  W*Cp) bf16
    b1p = _pack_per_channel(b1, W)
    b2p = _pack_per_channel(b2, W)

    cparams = pltpu.CompilerParams(
        dimension_semantics=("parallel",),
        vmem_limit_bytes=_vmem_limit_bytes(),
    )

    full2 = lambda n: (0, 0)
    full3 = lambda n: (0, 0, 0)
    perb3 = lambda n: (n, 0, 0)

    # -------------------- pass 1: conv1 + BN1 partials --------------------
    y1, s1, q1 = pl.pallas_call(
        _conv1_stats_kernel,
        out_shape=(jax.ShapeDtypeStruct((N, H, WCp), jnp.float32),
                   jax.ShapeDtypeStruct((N, 1, WCp), jnp.float32),
                   jax.ShapeDtypeStruct((N, 1, WCp), jnp.float32)),
        grid_spec=pltpu.PrefetchScalarGridSpec(
            num_scalar_prefetch=0,
            grid=(N,),
            in_specs=[
                pl.BlockSpec((None, H + 2, WCin), perb3),
                pl.BlockSpec((3, WCin, WCp), full3),
                pl.BlockSpec((1, WCp), full2),
            ],
            out_specs=(
                pl.BlockSpec((None, H, WCp), perb3),
                pl.BlockSpec((None, 1, WCp), perb3),
                pl.BlockSpec((None, 1, WCp), perb3),
            )),
        compiler_params=cparams,
    )(xp_packed, m1, b1p)

    inv_cnt = 1.0 / float(N * H * W)

    def stats_to_scale_shift(s, q, gamma, beta):
        # Fold per-batch (1, W*Cp) partials to per-channel stats (tiny XLA op).
        mean = s.reshape(N, W, -1).sum(axis=(0, 1)) * inv_cnt
        ex2 = q.reshape(N, W, -1).sum(axis=(0, 1)) * inv_cnt
        # TODO(synk): E[y^2]-mean^2 can cancel when |mean| >> std at production
        # scales; switch to per-strip Welford if that regime shows up.
        var = ex2 - mean * mean
        scale = gamma.astype(jnp.float32) * jax.lax.rsqrt(var + EPS)
        shift = beta.astype(jnp.float32) - mean * scale
        return _pack_per_channel(scale, W), _pack_per_channel(shift, W)

    sc1p, sh1p = stats_to_scale_shift(s1, q1, g1, be1)

    # ------------- pass 2: BN1+LeakyReLU + conv2 + BN2 partials ------------
    z, s2, q2 = pl.pallas_call(
        _bn1_act_conv2_stats_kernel,
        out_shape=(jax.ShapeDtypeStruct((N, H, WCp), jnp.float32),
                   jax.ShapeDtypeStruct((N, 1, WCp), jnp.float32),
                   jax.ShapeDtypeStruct((N, 1, WCp), jnp.float32)),
        grid_spec=pltpu.PrefetchScalarGridSpec(
            num_scalar_prefetch=0,
            grid=(N,),
            in_specs=[
                pl.BlockSpec((None, H, WCp), perb3),
                pl.BlockSpec((1, WCp), full2),
                pl.BlockSpec((1, WCp), full2),
                pl.BlockSpec((3, WCp, WCp), full3),
                pl.BlockSpec((1, WCp), full2),
            ],
            out_specs=(
                pl.BlockSpec((None, H, WCp), perb3),
                pl.BlockSpec((None, 1, WCp), perb3),
                pl.BlockSpec((None, 1, WCp), perb3),
            )),
        compiler_params=cparams,
    )(y1, sc1p, sh1p, m2, b2p)

    sc2p, sh2p = stats_to_scale_shift(s2, q2, g2, be2)

    # ------------- pass 3: BN2 affine + skip + LeakyReLU -------------------
    kernel3 = functools.partial(_bn2_res_act_kernel, skip=skip)
    ins = [z, sc2p, sh2p]
    in_specs = [
        pl.BlockSpec((None, H, WCp), perb3),
        pl.BlockSpec((1, WCp), full2),
        pl.BlockSpec((1, WCp), full2),
    ]
    if skip:
        # Un-rounded f32 residual; Cin == Cp so the packed layouts coincide.
        ins.append(x_nhwc.reshape(N, H, WCin))
        in_specs.append(pl.BlockSpec((None, H, WCp), perb3))

    out_packed = pl.pallas_call(
        kernel3,
        out_shape=jax.ShapeDtypeStruct((N, H, WCp), jnp.float32),
        grid_spec=pltpu.PrefetchScalarGridSpec(
            num_scalar_prefetch=0,
            grid=(N,),
            in_specs=in_specs,
            out_specs=pl.BlockSpec((None, H, WCp), perb3)),
        compiler_params=cparams,
    )(*ins)

    out = out_packed.reshape(N, H, W, Cp)
    return jnp.transpose(out, (0, 3, 1, 2))                # NCHW


# ---------------------------------------------------------------------------
# Pure-JAX reference.  bf16_ops=True mimics the kernel's bf16 MXU operands
# (inputs/weights/intermediate rounded to bf16, f32 accumulation) for a tight
# check; bf16_ops=False is the exact f32 math with a looser tolerance.
# ---------------------------------------------------------------------------
def _reference(x, params, expansion, *, bf16_ops):
    w1, b1, g1, be1, w2, b2, g2, be2 = params
    Cin, Cp = x.shape[1], w1.shape[0]
    skip = (Cin == Cp * expansion)

    def cast(a):
        return a.astype(jnp.bfloat16).astype(jnp.float32) if bf16_ops else a

    def conv_bn(t, w, b, g, be):
        y = jax.lax.conv_general_dilated(
            cast(t), cast(w), (1, 1), ((1, 1), (1, 1)),
            dimension_numbers=("NCHW", "OIHW", "NCHW"),
            precision=jax.lax.Precision.HIGHEST)
        y = y + b.reshape(1, -1, 1, 1)
        mean = jnp.mean(y, axis=(0, 2, 3), keepdims=True)
        var = jnp.mean(jnp.square(y - mean), axis=(0, 2, 3), keepdims=True)
        y = (y - mean) * jax.lax.rsqrt(var + EPS)
        return y * g.reshape(1, -1, 1, 1) + be.reshape(1, -1, 1, 1)

    lrelu = lambda t: jnp.where(t >= 0.0, t, NEG_SLOPE * t)
    out = lrelu(conv_bn(x, w1, b1, g1, be1))
    out = conv_bn(out, w2, b2, g2, be2)
    if skip:
        out = out + x                     # kernel also adds the un-rounded residual
    return lrelu(out)


if __name__ == "__main__":
    N, H, W = 2, 16, 16

    def make_case(key, inplanes, planes):
        ks = jax.random.split(key, 9)
        bnd1 = 1.0 / float((inplanes * 9) ** 0.5)   # Conv2d default init bound
        bnd2 = 1.0 / float((planes * 9) ** 0.5)
        x = jax.random.normal(ks[0], (N, inplanes, H, W), jnp.float32)
        params = (
            jax.random.uniform(ks[1], (planes, inplanes, 3, 3), jnp.float32, -bnd1, bnd1),
            jax.random.uniform(ks[2], (planes,), jnp.float32, -bnd1, bnd1),
            jax.random.uniform(ks[3], (planes,), jnp.float32, 0.5, 1.5),
            jax.random.uniform(ks[4], (planes,), jnp.float32, -0.5, 0.5),
            jax.random.uniform(ks[5], (planes, planes, 3, 3), jnp.float32, -bnd2, bnd2),
            jax.random.uniform(ks[6], (planes,), jnp.float32, -bnd2, bnd2),
            jax.random.uniform(ks[7], (planes,), jnp.float32, 0.5, 1.5),
            jax.random.uniform(ks[8], (planes,), jnp.float32, -0.5, 0.5),
        )
        return x, params

    key_a, key_b = jax.random.split(jax.random.PRNGKey(0))

    # Case A: default config (expansion=4, inplanes=4, planes=8) -> no skip.
    # W * planes = 128 -> fully lane-dense activations / output stores.
    x_a, p_a = make_case(key_a, 4, 8)
    out_a = jax.block_until_ready(res_layer_2d(x_a, *p_a, expansion=4))
    assert out_a.shape == (N, 8, H, W)
    assert float(jnp.max(jnp.abs(out_a - _reference(x_a, p_a, 4, bf16_ops=True)))) < 5e-3
    assert float(jnp.max(jnp.abs(out_a - _reference(x_a, p_a, 4, bf16_ops=False)))) < 5e-2

    # Case B: expansion=1, inplanes == planes == 4 -> residual skip path.
    x_b, p_b = make_case(key_b, 4, 4)
    out_b = jax.block_until_ready(res_layer_2d(x_b, *p_b, expansion=1))
    assert out_b.shape == (N, 4, H, W)
    assert float(jnp.max(jnp.abs(out_b - _reference(x_b, p_b, 1, bf16_ops=True)))) < 5e-3
    assert float(jnp.max(jnp.abs(out_b - _reference(x_b, p_b, 1, bf16_ops=False)))) < 5e-2

    print("KERNEL_OK")
</pallas_src>

<mosaic_0001>
module attributes {stable_mosaic.version = 11 : i64} {
  func.func @_conv1_stats_kernel(%arg0: i32, %arg1: memref<1x18x64xbf16, #tpu.memory_space<vmem>>, %arg2: memref<3x64x128xbf16, #tpu.memory_space<vmem>>, %arg3: memref<1x128xf32, #tpu.memory_space<vmem>>, %arg4: memref<1x16x128xf32, #tpu.memory_space<vmem>>, %arg5: memref<1x1x128xf32, #tpu.memory_space<vmem>>, %arg6: memref<1x1x128xf32, #tpu.memory_space<vmem>>) attributes {dimension_semantics = [#tpu.dimension_semantics<parallel>], iteration_bounds = array<i64: 2>, scalar_prefetch = 0 : i64, scratch_operands = 0 : i64, tpu.core_type = #tpu.core_type<tc>, window_params = [{transform_indices = @transform_0, window_bounds = array<i64: 1, 18, 64>}, {pipeline_mode = #tpu.pipeline_mode<synchronous>, transform_indices = @transform_1, window_bounds = array<i64: 3, 64, 128>}, {pipeline_mode = #tpu.pipeline_mode<synchronous>, transform_indices = @transform_2, window_bounds = array<i64: 1, 128>}, {transform_indices = @transform_3, window_bounds = array<i64: 1, 16, 128>}, {transform_indices = @transform_4, window_bounds = array<i64: 1, 1, 128>}, {transform_indices = @transform_5, window_bounds = array<i64: 1, 1, 128>}]} {
    %c0 = arith.constant 0 : index
    %c0_0 = arith.constant 0 : index
    %c0_1 = arith.constant 0 : index
    %0 = vector.load %arg1[%c0, %c0_0, %c0_1] : memref<1x18x64xbf16, #tpu.memory_space<vmem>>, vector<1x18x64xbf16>
    %1 = vector.shape_cast %0 : vector<1x18x64xbf16> to vector<18x64xbf16>
    %2 = arith.extf %1 : vector<18x64xbf16> to vector<18x64xf32>
    %3 = vector.extract_strided_slice %2 {offsets = [0, 0], sizes = [16, 64], strides = [1, 1]} : vector<18x64xf32> to vector<16x64xf32>
    %4 = arith.truncf %3 : vector<16x64xf32> to vector<16x64xbf16>
    %c0_2 = arith.constant 0 : index
    %c0_3 = arith.constant 0 : index
    %c0_4 = arith.constant 0 : index
    %5 = vector.load %arg2[%c0_2, %c0_3, %c0_4] : memref<3x64x128xbf16, #tpu.memory_space<vmem>>, vector<1x64x128xbf16>
    %6 = vector.shape_cast %5 : vector<1x64x128xbf16> to vector<64x128xbf16>
    %cst = arith.constant dense<0.000000e+00> : vector<16x128xf32>
    %7 = tpu.matmul %4, %6, %cst {dimension_numbers = #tpu.dot_dimension_numbers<[1], [0], [0], [1], [0, 0, 1, 1], [], []>} : vector<16x64xbf16>, vector<64x128xbf16>, vector<16x128xf32> -> vector<16x128xf32>
    %8 = vector.extract_strided_slice %2 {offsets = [1, 0], sizes = [16, 64], strides = [1, 1]} : vector<18x64xf32> to vector<16x64xf32>
    %9 = arith.truncf %8 : vector<16x64xf32> to vector<16x64xbf16>
    %c1 = arith.constant 1 : index
    %c0_5 = arith.constant 0 : index
    %c0_6 = arith.constant 0 : index
    %10 = vector.load %arg2[%c1, %c0_5, %c0_6] : memref<3x64x128xbf16, #tpu.memory_space<vmem>>, vector<1x64x128xbf16>
    %11 = vector.shape_cast %10 : vector<1x64x128xbf16> to vector<64x128xbf16>
    %cst_7 = arith.constant dense<0.000000e+00> : vector<16x128xf32>
    %12 = tpu.matmul %9, %11, %cst_7 {dimension_numbers = #tpu.dot_dimension_numbers<[1], [0], [0], [1], [0, 0, 1, 1], [], []>} : vector<16x64xbf16>, vector<64x128xbf16>, vector<16x128xf32> -> vector<16x128xf32>
    %13 = arith.addf %7, %12 : vector<16x128xf32>
    %14 = vector.extract_strided_slice %2 {offsets = [2, 0], sizes = [16, 64], strides = [1, 1]} : vector<18x64xf32> to vector<16x64xf32>
    %15 = arith.truncf %14 : vector<16x64xf32> to vector<16x64xbf16>
    %c2 = arith.constant 2 : index
    %c0_8 = arith.constant 0 : index
    %c0_9 = arith.constant 0 : index
    %16 = vector.load %arg2[%c2, %c0_8, %c0_9] : memref<3x64x128xbf16, #tpu.memory_space<vmem>>, vector<1x64x128xbf16>
    %17 = vector.shape_cast %16 : vector<1x64x128xbf16> to vector<64x128xbf16>
    %cst_10 = arith.constant dense<0.000000e+00> : vector<16x128xf32>
    %18 = tpu.matmul %15, %17, %cst_10 {dimension_numbers = #tpu.dot_dimension_numbers<[1], [0], [0], [1], [0, 0, 1, 1], [], []>} : vector<16x64xbf16>, vector<64x128xbf16>, vector<16x128xf32> -> vector<16x128xf32>
    %19 = arith.addf %13, %18 : vector<16x128xf32>
    %c0_11 = arith.constant 0 : index
    %c0_12 = arith.constant 0 : index
    %20 = vector.load %arg3[%c0_11, %c0_12] : memref<1x128xf32, #tpu.memory_space<vmem>>, vector<1x128xf32>
    %21 = vector.broadcast %20 : vector<1x128xf32> to vector<16x128xf32>
    %22 = arith.addf %19, %21 : vector<16x128xf32>
    %c0_13 = arith.constant 0 : index
    %c0_14 = arith.constant 0 : index
    %c0_15 = arith.constant 0 : index
    %23 = vector.load %arg4[%c0_13, %c0_14, %c0_15] : memref<1x16x128xf32, #tpu.memory_space<vmem>>, vector<1x16x128xf32>
    %24 = vector.shape_cast %23 : vector<1x16x128xf32> to vector<16x128xf32>
    %25 = vector.shape_cast %22 : vector<16x128xf32> to vector<1x16x128xf32>
    tpu.vector_store %arg4[%c0_13, %c0_14, %c0_15], %25 {strides = array<i32>} : memref<1x16x128xf32, #tpu.memory_space<vmem>>, vector<1x16x128xf32>,
    %cst_16 = arith.constant dense<0.000000e+00> : vector<128xf32>
    %26 = vector.multi_reduction <add>, %22, %cst_16 [0] : vector<16x128xf32> to vector<128xf32>
    %27 = vector.shape_cast %26 : vector<128xf32> to vector<1x128xf32>
    %c0_17 = arith.constant 0 : index
    %c0_18 = arith.constant 0 : index
    %c0_19 = arith.constant 0 : index
    %28 = vector.load %arg5[%c0_17, %c0_18, %c0_19] : memref<1x1x128xf32, #tpu.memory_space<vmem>>, vector<1x1x128xf32>
    %29 = vector.shape_cast %28 : vector<1x1x128xf32> to vector<1x128xf32>
    %30 = vector.shape_cast %27 : vector<1x128xf32> to vector<1x1x128xf32>
    tpu.vector_store %arg5[%c0_17, %c0_18, %c0_19], %30 {strides = array<i32>} : memref<1x1x128xf32, #tpu.memory_space<vmem>>, vector<1x1x128xf32>,
    %31 = arith.mulf %22, %22 : vector<16x128xf32>
    %cst_20 = arith.constant dense<0.000000e+00> : vector<128xf32>
    %32 = vector.multi_reduction <add>, %31, %cst_20 [0] : vector<16x128xf32> to vector<128xf32>
    %33 = vector.shape_cast %32 : vector<128xf32> to vector<1x128xf32>
    %c0_21 = arith.constant 0 : index
    %c0_22 = arith.constant 0 : index
    %c0_23 = arith.constant 0 : index
    %34 = vector.load %arg6[%c0_21, %c0_22, %c0_23] : memref<1x1x128xf32, #tpu.memory_space<vmem>>, vector<1x1x128xf32>
    %35 = vector.shape_cast %34 : vector<1x1x128xf32> to vector<1x128xf32>
    %36 = vector.shape_cast %33 : vector<1x128xf32> to vector<1x1x128xf32>
    tpu.vector_store %arg6[%c0_21, %c0_22, %c0_23], %36 {strides = array<i32>} : memref<1x1x128xf32, #tpu.memory_space<vmem>>, vector<1x1x128xf32>,
    return
  }
  func.func @transform_0(%arg0: i32) -> (i32, i32, i32) {
    %c0_i32 = arith.constant 0 : i32
    %c0_i32_0 = arith.constant 0 : i32
    %c0_i32_1 = arith.constant 0 : i32
    return %arg0, %c0_i32, %c0_i32_0 : i32, i32, i32
  }
  func.func @transform_1(%arg0: i32) -> (i32, i32, i32) {
    %c0_i32 = arith.constant 0 : i32
    %c0_i32_0 = arith.constant 0 : i32
    %c0_i32_1 = arith.constant 0 : i32
    %c0_i32_2 = arith.constant 0 : i32
    return %c0_i32, %c0_i32_0, %c0_i32_1 : i32, i32, i32
  }
  func.func @transform_2(%arg0: i32) -> (i32, i32) {
    %c0_i32 = arith.constant 0 : i32
    %c0_i32_0 = arith.constant 0 : i32
    %c0_i32_1 = arith.constant 0 : i32
    return %c0_i32, %c0_i32_0 : i32, i32
  }
  func.func @transform_3(%arg0: i32) -> (i32, i32, i32) {
    %c0_i32 = arith.constant 0 : i32
    %c0_i32_0 = arith.constant 0 : i32
    %c0_i32_1 = arith.constant 0 : i32
    return %arg0, %c0_i32, %c0_i32_0 : i32, i32, i32
  }
  func.func @transform_4(%arg0: i32) -> (i32, i32, i32) {
    %c0_i32 = arith.constant 0 : i32
    %c0_i32_0 = arith.constant 0 : i32
    %c0_i32_1 = arith.constant 0 : i32
    return %arg0, %c0_i32, %c0_i32_0 : i32, i32, i32
  }
  func.func @transform_5(%arg0: i32) -> (i32, i32, i32) {
    %c0_i32 = arith.constant 0 : i32
    %c0_i32_0 = arith.constant 0 : i32
    %c0_i32_1 = arith.constant 0 : i32
    return %arg0, %c0_i32, %c0_i32_0 : i32, i32, i32
  }
}

module attributes {stable_mosaic.version = 11 : i64} {
  func.func @_bn1_act_conv2_stats_kernel(%arg0: i32, %arg1: memref<1x16x128xf32, #tpu.memory_space<vmem>>, %arg2: memref<1x128xf32, #tpu.memory_space<vmem>>, %arg3: memref<1x128xf32, #tpu.memory_space<vmem>>, %arg4: memref<3x128x128xbf16, #tpu.memory_space<vmem>>, %arg5: memref<1x128xf32, #tpu.memory_space<vmem>>, %arg6: memref<1x16x128xf32, #tpu.memory_space<vmem>>, %arg7: memref<1x1x128xf32, #tpu.memory_space<vmem>>, %arg8: memref<1x1x128xf32, #tpu.memory_space<vmem>>) attributes {dimension_semantics = [#tpu.dimension_semantics<parallel>], iteration_bounds = array<i64: 2>, scalar_prefetch = 0 : i64, scratch_operands = 0 : i64, tpu.core_type = #tpu.core_type<tc>, window_params = [{transform_indices = @transform_0, window_bounds = array<i64: 1, 16, 128>}, {pipeline_mode = #tpu.pipeline_mode<synchronous>, transform_indices = @transform_1, window_bounds = array<i64: 1, 128>}, {pipeline_mode = #tpu.pipeline_mode<synchronous>, transform_indices = @transform_2, window_bounds = array<i64: 1, 128>}, {pipeline_mode = #tpu.pipeline_mode<synchronous>, transform_indices = @transform_3, window_bounds = array<i64: 3, 128, 128>}, {pipeline_mode = #tpu.pipeline_mode<synchronous>, transform_indices = @transform_4, window_bounds = array<i64: 1, 128>}, {transform_indices = @transform_5, window_bounds = array<i64: 1, 16, 128>}, {transform_indices = @transform_6, window_bounds = array<i64: 1, 1, 128>}, {transform_indices = @transform_7, window_bounds = array<i64: 1, 1, 128>}]} {
    %c0 = arith.constant 0 : index
    %c0_0 = arith.constant 0 : index
    %c0_1 = arith.constant 0 : index
    %0 = vector.load %arg1[%c0, %c0_0, %c0_1] : memref<1x16x128xf32, #tpu.memory_space<vmem>>, vector<1x16x128xf32>
    %1 = vector.shape_cast %0 : vector<1x16x128xf32> to vector<16x128xf32>
    %c0_2 = arith.constant 0 : index
    %c0_3 = arith.constant 0 : index
    %2 = vector.load %arg2[%c0_2, %c0_3] : memref<1x128xf32, #tpu.memory_space<vmem>>, vector<1x128xf32>
    %3 = vector.broadcast %2 : vector<1x128xf32> to vector<16x128xf32>
    %4 = arith.mulf %1, %3 : vector<16x128xf32>
    %c0_4 = arith.constant 0 : index
    %c0_5 = arith.constant 0 : index
    %5 = vector.load %arg3[%c0_4, %c0_5] : memref<1x128xf32, #tpu.memory_space<vmem>>, vector<1x128xf32>
    %6 = vector.broadcast %5 : vector<1x128xf32> to vector<16x128xf32>
    %7 = arith.addf %4, %6 : vector<16x128xf32>
    %cst = arith.constant 0.00999999977 : f32
    %8 = vector.broadcast %cst : f32 to vector<16x128xf32>
    %9 = arith.mulf %8, %7 : vector<16x128xf32>
    %10 = arith.maximumf %7, %9 : vector<16x128xf32>
    %cst_6 = arith.constant 0.000000e+00 : f32
    %11 = vector.broadcast %cst_6 : f32 to vector<1x128xf32>
    %12 = tpu.concatenate %11, %10, %11 in 0 : vector<1x128xf32>, vector<16x128xf32>, vector<1x128xf32> -> vector<18x128xf32>
    %13 = vector.extract_strided_slice %12 {offsets = [0, 0], sizes = [16, 128], strides = [1, 1]} : vector<18x128xf32> to vector<16x128xf32>
    %14 = arith.truncf %13 : vector<16x128xf32> to vector<16x128xbf16>
    %c0_7 = arith.constant 0 : index
    %c0_8 = arith.constant 0 : index
    %c0_9 = arith.constant 0 : index
    %15 = vector.load %arg4[%c0_7, %c0_8, %c0_9] : memref<3x128x128xbf16, #tpu.memory_space<vmem>>, vector<1x128x128xbf16>
    %16 = vector.shape_cast %15 : vector<1x128x128xbf16> to vector<128x128xbf16>
    %cst_10 = arith.constant dense<0.000000e+00> : vector<16x128xf32>
    %17 = tpu.matmul %14, %16, %cst_10 {dimension_numbers = #tpu.dot_dimension_numbers<[1], [0], [0], [1], [0, 0, 1, 1], [], []>} : vector<16x128xbf16>, vector<128x128xbf16>, vector<16x128xf32> -> vector<16x128xf32>
    %18 = vector.extract_strided_slice %12 {offsets = [1, 0], sizes = [16, 128], strides = [1, 1]} : vector<18x128xf32> to vector<16x128xf32>
    %19 = arith.truncf %18 : vector<16x128xf32> to vector<16x128xbf16>
    %c1 = arith.constant 1 : index
    %c0_11 = arith.constant 0 : index
    %c0_12 = arith.constant 0 : index
    %20 = vector.load %arg4[%c1, %c0_11, %c0_12] : memref<3x128x128xbf16, #tpu.memory_space<vmem>>, vector<1x128x128xbf16>
    %21 = vector.shape_cast %20 : vector<1x128x128xbf16> to vector<128x128xbf16>
    %cst_13 = arith.constant dense<0.000000e+00> : vector<16x128xf32>
    %22 = tpu.matmul %19, %21, %cst_13 {dimension_numbers = #tpu.dot_dimension_numbers<[1], [0], [0], [1], [0, 0, 1, 1], [], []>} : vector<16x128xbf16>, vector<128x128xbf16>, vector<16x128xf32> -> vector<16x128xf32>
    %23 = arith.addf %17, %22 : vector<16x128xf32>
    %24 = vector.extract_strided_slice %12 {offsets = [2, 0], sizes = [16, 128], strides = [1, 1]} : vector<18x128xf32> to vector<16x128xf32>
    %25 = arith.truncf %24 : vector<16x128xf32> to vector<16x128xbf16>
    %c2 = arith.constant 2 : index
    %c0_14 = arith.constant 0 : index
    %c0_15 = arith.constant 0 : index
    %26 = vector.load %arg4[%c2, %c0_14, %c0_15] : memref<3x128x128xbf16, #tpu.memory_space<vmem>>, vector<1x128x128xbf16>
    %27 = vector.shape_cast %26 : vector<1x128x128xbf16> to vector<128x128xbf16>
    %cst_16 = arith.constant dense<0.000000e+00> : vector<16x128xf32>
    %28 = tpu.matmul %25, %27, %cst_16 {dimension_numbers = #tpu.dot_dimension_numbers<[1], [0], [0], [1], [0, 0, 1, 1], [], []>} : vector<16x128xbf16>, vector<128x128xbf16>, vector<16x128xf32> -> vector<16x128xf32>
    %29 = arith.addf %23, %28 : vector<16x128xf32>
    %c0_17 = arith.constant 0 : index
    %c0_18 = arith.constant 0 : index
    %30 = vector.load %arg5[%c0_17, %c0_18] : memref<1x128xf32, #tpu.memory_space<vmem>>, vector<1x128xf32>
    %31 = vector.broadcast %30 : vector<1x128xf32> to vector<16x128xf32>
    %32 = arith.addf %29, %31 : vector<16x128xf32>
    %c0_19 = arith.constant 0 : index
    %c0_20 = arith.constant 0 : index
    %c0_21 = arith.constant 0 : index
    %33 = vector.load %arg6[%c0_19, %c0_20, %c0_21] : memref<1x16x128xf32, #tpu.memory_space<vmem>>, vector<1x16x128xf32>
    %34 = vector.shape_cast %33 : vector<1x16x128xf32> to vector<16x128xf32>
    %35 = vector.shape_cast %32 : vector<16x128xf32> to vector<1x16x128xf32>
    tpu.vector_store %arg6[%c0_19, %c0_20, %c0_21], %35 {strides = array<i32>} : memref<1x16x128xf32, #tpu.memory_space<vmem>>, vector<1x16x128xf32>,
    %cst_22 = arith.constant dense<0.000000e+00> : vector<128xf32>
    %36 = vector.multi_reduction <add>, %32, %cst_22 [0] : vector<16x128xf32> to vector<128xf32>
    %37 = vector.shape_cast %36 : vector<128xf32> to vector<1x128xf32>
    %c0_23 = arith.constant 0 : index
    %c0_24 = arith.constant 0 : index
    %c0_25 = arith.constant 0 : index
    %38 = vector.load %arg7[%c0_23, %c0_24, %c0_25] : memref<1x1x128xf32, #tpu.memory_space<vmem>>, vector<1x1x128xf32>
    %39 = vector.shape_cast %38 : vector<1x1x128xf32> to vector<1x128xf32>
    %40 = vector.shape_cast %37 : vector<1x128xf32> to vector<1x1x128xf32>
    tpu.vector_store %arg7[%c0_23, %c0_24, %c0_25], %40 {strides = array<i32>} : memref<1x1x128xf32, #tpu.memory_space<vmem>>, vector<1x1x128xf32>,
    %41 = arith.mulf %32, %32 : vector<16x128xf32>
    %cst_26 = arith.constant dense<0.000000e+00> : vector<128xf32>
    %42 = vector.multi_reduction <add>, %41, %cst_26 [0] : vector<16x128xf32> to vector<128xf32>
    %43 = vector.shape_cast %42 : vector<128xf32> to vector<1x128xf32>
    %c0_27 = arith.constant 0 : index
    %c0_28 = arith.constant 0 : index
    %c0_29 = arith.constant 0 : index
    %44 = vector.load %arg8[%c0_27, %c0_28, %c0_29] : memref<1x1x128xf32, #tpu.memory_space<vmem>>, vector<1x1x128xf32>
    %45 = vector.shape_cast %44 : vector<1x1x128xf32> to vector<1x128xf32>
    %46 = vector.shape_cast %43 : vector<1x128xf32> to vector<1x1x128xf32>
    tpu.vector_store %arg8[%c0_27, %c0_28, %c0_29], %46 {strides = array<i32>} : memref<1x1x128xf32, #tpu.memory_space<vmem>>, vector<1x1x128xf32>,
    return
  }
  func.func @transform_0(%arg0: i32) -> (i32, i32, i32) {
    %c0_i32 = arith.constant 0 : i32
    %c0_i32_0 = arith.constant 0 : i32
    %c0_i32_1 = arith.constant 0 : i32
    return %arg0, %c0_i32, %c0_i32_0 : i32, i32, i32
  }
  func.func @transform_1(%arg0: i32) -> (i32, i32) {
    %c0_i32 = arith.constant 0 : i32
    %c0_i32_0 = arith.constant 0 : i32
    %c0_i32_1 = arith.constant 0 : i32
    return %c0_i32, %c0_i32_0 : i32, i32
  }
  func.func @transform_2(%arg0: i32) -> (i32, i32) {
    %c0_i32 = arith.constant 0 : i32
    %c0_i32_0 = arith.constant 0 : i32
    %c0_i32_1 = arith.constant 0 : i32
    return %c0_i32, %c0_i32_0 : i32, i32
  }
  func.func @transform_3(%arg0: i32) -> (i32, i32, i32) {
    %c0_i32 = arith.constant 0 : i32
    %c0_i32_0 = arith.constant 0 : i32
    %c0_i32_1 = arith.constant 0 : i32
    %c0_i32_2 = arith.constant 0 : i32
    return %c0_i32, %c0_i32_0, %c0_i32_1 : i32, i32, i32
  }
  func.func @transform_4(%arg0: i32) -> (i32, i32) {
    %c0_i32 = arith.constant 0 : i32
    %c0_i32_0 = arith.constant 0 : i32
    %c0_i32_1 = arith.constant 0 : i32
    return %c0_i32, %c0_i32_0 : i32, i32
  }
  func.func @transform_5(%arg0: i32) -> (i32, i32, i32) {
    %c0_i32 = arith.constant 0 : i32
    %c0_i32_0 = arith.constant 0 : i32
    %c0_i32_1 = arith.constant 0 : i32
    return %arg0, %c0_i32, %c0_i32_0 : i32, i32, i32
  }
  func.func @transform_6(%arg0: i32) -> (i32, i32, i32) {
    %c0_i32 = arith.constant 0 : i32
    %c0_i32_0 = arith.constant 0 : i32
    %c0_i32_1 = arith.constant 0 : i32
    return %arg0, %c0_i32, %c0_i32_0 : i32, i32, i32
  }
  func.func @transform_7(%arg0: i32) -> (i32, i32, i32) {
    %c0_i32 = arith.constant 0 : i32
    %c0_i32_0 = arith.constant 0 : i32
    %c0_i32_1 = arith.constant 0 : i32
    return %arg0, %c0_i32, %c0_i32_0 : i32, i32, i32
  }
}

module attributes {stable_mosaic.version = 11 : i64} {
  func.func @_bn2_res_act_kernel(%arg0: i32, %arg1: memref<1x16x128xf32, #tpu.memory_space<vmem>>, %arg2: memref<1x128xf32, #tpu.memory_space<vmem>>, %arg3: memref<1x128xf32, #tpu.memory_space<vmem>>, %arg4: memref<1x16x128xf32, #tpu.memory_space<vmem>>) attributes {dimension_semantics = [#tpu.dimension_semantics<parallel>], iteration_bounds = array<i64: 2>, scalar_prefetch = 0 : i64, scratch_operands = 0 : i64, tpu.core_type = #tpu.core_type<tc>, window_params = [{transform_indices = @transform_0, window_bounds = array<i64: 1, 16, 128>}, {pipeline_mode = #tpu.pipeline_mode<synchronous>, transform_indices = @transform_1, window_bounds = array<i64: 1, 128>}, {pipeline_mode = #tpu.pipeline_mode<synchronous>, transform_indices = @transform_2, window_bounds = array<i64: 1, 128>}, {transform_indices = @transform_3, window_bounds = array<i64: 1, 16, 128>}]} {
    %c0 = arith.constant 0 : index
    %c0_0 = arith.constant 0 : index
    %c0_1 = arith.constant 0 : index
    %0 = vector.load %arg1[%c0, %c0_0, %c0_1] : memref<1x16x128xf32, #tpu.memory_space<vmem>>, vector<1x16x128xf32>
    %1 = vector.shape_cast %0 : vector<1x16x128xf32> to vector<16x128xf32>
    %c0_2 = arith.constant 0 : index
    %c0_3 = arith.constant 0 : index
    %2 = vector.load %arg2[%c0_2, %c0_3] : memref<1x128xf32, #tpu.memory_space<vmem>>, vector<1x128xf32>
    %3 = vector.broadcast %2 : vector<1x128xf32> to vector<16x128xf32>
    %4 = arith.mulf %1, %3 : vector<16x128xf32>
    %c0_4 = arith.constant 0 : index
    %c0_5 = arith.constant 0 : index
    %5 = vector.load %arg3[%c0_4, %c0_5] : memref<1x128xf32, #tpu.memory_space<vmem>>, vector<1x128xf32>
    %6 = vector.broadcast %5 : vector<1x128xf32> to vector<16x128xf32>
    %7 = arith.addf %4, %6 : vector<16x128xf32>
    %cst = arith.constant 0.00999999977 : f32
    %8 = vector.broadcast %cst : f32 to vector<16x128xf32>
    %9 = arith.mulf %8, %7 : vector<16x128xf32>
    %10 = arith.maximumf %7, %9 : vector<16x128xf32>
    %c0_6 = arith.constant 0 : index
    %c0_7 = arith.constant 0 : index
    %c0_8 = arith.constant 0 : index
    %11 = vector.load %arg4[%c0_6, %c0_7, %c0_8] : memref<1x16x128xf32, #tpu.memory_space<vmem>>, vector<1x16x128xf32>
    %12 = vector.shape_cast %11 : vector<1x16x128xf32> to vector<16x128xf32>
    %13 = vector.shape_cast %10 : vector<16x128xf32> to vector<1x16x128xf32>
    tpu.vector_store %arg4[%c0_6, %c0_7, %c0_8], %13 {strides = array<i32>} : memref<1x16x128xf32, #tpu.memory_space<vmem>>, vector<1x16x128xf32>,
    return
  }
  func.func @transform_0(%arg0: i32) -> (i32, i32, i32) {
    %c0_i32 = arith.constant 0 : i32
    %c0_i32_0 = arith.constant 0 : i32
    %c0_i32_1 = arith.constant 0 : i32
    return %arg0, %c0_i32, %c0_i32_0 : i32, i32, i32
  }
  func.func @transform_1(%arg0: i32) -> (i32, i32) {
    %c0_i32 = arith.constant 0 : i32
    %c0_i32_0 = arith.constant 0 : i32
    %c0_i32_1 = arith.constant 0 : i32
    return %c0_i32, %c0_i32_0 : i32, i32
  }
  func.func @transform_2(%arg0: i32) -> (i32, i32) {
    %c0_i32 = arith.constant 0 : i32
    %c0_i32_0 = arith.constant 0 : i32
    %c0_i32_1 = arith.constant 0 : i32
    return %c0_i32, %c0_i32_0 : i32, i32
  }
  func.func @transform_3(%arg0: i32) -> (i32, i32, i32) {
    %c0_i32 = arith.constant 0 : i32
    %c0_i32_0 = arith.constant 0 : i32
    %c0_i32_1 = arith.constant 0 : i32
    return %arg0, %c0_i32, %c0_i32_0 : i32, i32, i32
  }
}

</mosaic_0001>

<bundles_post_ra>
// kernel: tile.33
= control target key start
LH: loop header
LB: loop body
LE: loop exit
PB: predicated region body
PF: predicated region fallthrough
CT: control target
= control target key end

     0   :  { %s28_s0 = inlined_call_operand.vmem [shape: f32[8], index: 0, kind: input, shape index: {}]   ;;  %s29_s1 = inlined_call_operand.vmem [shape: f32[16,8], index: 1, kind: output, shape index: {}]  }
   0x1   :  { %v4_v0 = vld [vmem:[%s28_s0] ss:$0 sm:$0xff] }
   0x2   :  { %5 = vst [vmem:[%s29_s1] sm:$0xff] %v4_v0  ;;  %8 = vst [vmem:[%s29_s1 + $0x8] sm:$0xff] %v4_v0 }

// kernel: tile.34
= control target key start
LH: loop header
LB: loop body
LE: loop exit
PB: predicated region body
PF: predicated region fallthrough
CT: control target
= control target key end

     0   :  { %s131_s10 = smov 120   ;;  %s132_s11 = smov 104   ;;  %vm3_vm0 = vcmask 64512   ;;  %vm9_vm1 = vcmask 1048512   ;;  %vm15_vm2 = vcmask 982912   ;;  %vm21_vm3 = vcmask 917312   ;;  %s207_s0 = inlined_call_operand.vmem [shape: f32[16,8], index: 0, kind: input, shape index: {}]   ;;  %s208_s1 = inlined_call_operand.vmem [shape: f32[1,128], index: 1, kind: output, shape index: {}]  }
   0x1   :  { %v101_v0 = vld [vmem:[%s207_s0 + $0xf] sm:$0x1]   ;;  %v103_v1 = vld [vmem:[%s207_s0 + $0xd] sm:$0x1]   ;;  %v102_v2 = vld [vmem:[%s207_s0 + $0xe] sm:$0x1]  }
   0x2   :  { %7 = vrot.lane.b32.xlu0 %v101_v0, %s131_s10  ;;  %19 = vrot.lane.b32.xlu1 %v103_v1, %s132_s11  ;;  %v104_v3 = vld [vmem:[%s207_s0 + $0xc] sm:$0x1]   ;;  %s133_s16 = smov 112   ;;  %s134_s17 = smov 96   ;;  %v105_v4 = vld [vmem:[%s207_s0 + $0xb] sm:$0x1]  }
   0x3   :  { %v106_v5 = vld [vmem:[%s207_s0 + $0xa] sm:$0x1]   ;;  %v2_v6 = vld [vmem:[%s207_s0] sm:$0x1]   ;;  %s135_s24 = smov 88   ;;  %s136_s25 = smov 80  }
   0x4   :  { %4 = vst.msk [vmem:[#allocation0] sm:$0x1] %vm3_vm0, %v2_v6   ;;  %v107_v7 = vld [vmem:[%s207_s0 + $0x9] sm:$0x1]   ;;  %v108_v8 = vld [vmem:[%s207_s0 + $0x8] sm:$0x1]  }
   0x5   :  { %s137_s30 = smov 72   ;;  %s138_s2 = smov 64   ;;  %v109_v9 = vld [vmem:[%s207_s0 + $0x7] sm:$0x1]   ;;  %v110_v10 = vld [vmem:[%s207_s0 + $0x6] sm:$0x1]  }
   0x6   :  { %13 = vrot.lane.b32.xlu0 %v102_v2, %s133_s16  ;;  %25 = vrot.lane.b32.xlu1 %v104_v3, %s134_s17  ;;  %s139_s7 = smov 56   ;;  %s140_s8 = smov 48   ;;  %v111_v11 = vld [vmem:[%s207_s0 + $0x5] sm:$0x1]   ;;  %v112_v12 = vld [vmem:[%s207_s0 + $0x4] sm:$0x1]  }
   0x7   :  { %s141_s13 = smov 40   ;;  %s142_s14 = smov 32   ;;  %v113_v13 = vld [vmem:[%s207_s0 + $0x3] sm:$0x1]   ;;  %v114_v14 = vld [vmem:[%s207_s0 + $0x2] sm:$0x1]  }
   0x8   :  { %s143_s19 = smov 24   ;;  %s144_s20 = smov 16   ;;  %v115_v15 = vld [vmem:[%s207_s0 + $0x1] sm:$0x1]   ;;  %vm27_vm4 = vcmask 851712   ;;  %vm33_vm5 = vcmask 786112  }
   0x9   :  { %s145_s0 = smov 8   ;;  %vm39_vm6 = vcmask 720512   ;;  %vm45_vm7 = vcmask 654912   ;;  %vm51_vm8 = vcmask 589312   ;;  %vm57_vm9 = vcmask 523712  }
   0xa   :  { %31 = vrot.lane.b32.xlu0 %v105_v4, %s135_s24  ;;  %37 = vrot.lane.b32.xlu1 %v106_v5, %s136_s25  ;;  %vm63_vm10 = vcmask 458112   ;;  %vm69_vm11 = vcmask 392512   ;;  %vm75_vm12 = vcmask 326912   ;;  %vm81_vm13 = vcmask 261312  }
   0xb   :  { %vm87_vm14 = vcmask 195712   ;;  %vm93_vm15 = vcmask 130112  }
   0xe   :  { %43 = vrot.lane.b32.xlu0 %v107_v7, %s137_s30  ;;  %49 = vrot.lane.b32.xlu1 %v108_v8, %s138_s2 }
  0x12   :  { %55 = vrot.lane.b32.xlu0 %v109_v9, %s139_s7  ;;  %61 = vrot.lane.b32.xlu1 %v110_v10, %s140_s8 }
  0x16   :  { %67 = vrot.lane.b32.xlu0 %v111_v11, %s141_s13  ;;  %73 = vrot.lane.b32.xlu1 %v112_v12, %s142_s14 }
  0x1a   :  { %79 = vrot.lane.b32.xlu0 %v113_v13, %s143_s19  ;;  %85 = vrot.lane.b32.xlu1 %v114_v14, %s144_s20 }
  0x1e   :  { %91 = vrot.lane.b32.xlu0 %v115_v15, %s145_s0 }
  0x74   :  { %v8_v16 = vpop.permute.xlu0 %7   ;;  %v20_v17 = vpop.permute.xlu1 %19  }
  0x75   :  { %10 = vst.msk [vmem:[#allocation0] sm:$0x1] %vm9_vm1, %v8_v16  }
  0x78   :  { %v14_v18 = vpop.permute.xlu0 %13   ;;  %v26_v19 = vpop.permute.xlu1 %25  }
  0x79   :  { %16 = vst.msk [vmem:[#allocation0] sm:$0x1] %vm15_vm2, %v14_v18  }
  0x7a   :  { %22 = vst.msk [vmem:[#allocation0] sm:$0x1] %vm21_vm3, %v20_v17  }
  0x7b   :  { %28 = vst.msk [vmem:[#allocation0] sm:$0x1] %vm27_vm4, %v26_v19  }
  0x7c   :  { %v32_v20 = vpop.permute.xlu0 %31   ;;  %v38_v21 = vpop.permute.xlu1 %37  }
  0x7d   :  { %34 = vst.msk [vmem:[#allocation0] sm:$0x1] %vm33_vm5, %v32_v20  }
  0x7e   :  { %40 = vst.msk [vmem:[#allocation0] sm:$0x1] %vm39_vm6, %v38_v21  }
  0x80   :  { %v44_v22 = vpop.permute.xlu0 %43   ;;  %v50_v23 = vpop.permute.xlu1 %49  }
  0x81   :  { %46 = vst.msk [vmem:[#allocation0] sm:$0x1] %vm45_vm7, %v44_v22  }
  0x82   :  { %52 = vst.msk [vmem:[#allocation0] sm:$0x1] %vm51_vm8, %v50_v23  }
  0x84   :  { %v56_v24 = vpop.permute.xlu0 %55   ;;  %v62_v25 = vpop.permute.xlu1 %61  }
  0x85   :  { %58 = vst.msk [vmem:[#allocation0] sm:$0x1] %vm57_vm9, %v56_v24  }
  0x86   :  { %64 = vst.msk [vmem:[#allocation0] sm:$0x1] %vm63_vm10, %v62_v25  }
  0x88   :  { %v68_v26 = vpop.permute.xlu0 %67   ;;  %v74_v27 = vpop.permute.xlu1 %73  }
  0x89   :  { %70 = vst.msk [vmem:[#allocation0] sm:$0x1] %vm69_vm11, %v68_v26  }
  0x8a   :  { %76 = vst.msk [vmem:[#allocation0] sm:$0x1] %vm75_vm12, %v74_v27  }
  0x8c   :  { %v80_v28 = vpop.permute.xlu0 %79   ;;  %v86_v29 = vpop.permute.xlu1 %85  }
  0x8d   :  { %82 = vst.msk [vmem:[#allocation0] sm:$0x1] %vm81_vm13, %v80_v28  }
  0x8e   :  { %88 = vst.msk [vmem:[#allocation0] sm:$0x1] %vm87_vm14, %v86_v29  }
  0x90   :  { %v92_v30 = vpop.permute.xlu0 %91  }
  0x91   :  { %94 = vst.msk [vmem:[#allocation0] sm:$0x1] %vm93_vm15, %v92_v30  }
  0x98   :  { %v98_v31 = vld [vmem:[#allocation0] sm:$0x1] }
  0x99   :  { %100 = vst [vmem:[%s208_s1] sm:$0x1] %v98_v31 }

// kernel: res_layer_2d.3
= control target key start
LH: loop header
LB: loop body
LE: loop exit
PB: predicated region body
PF: predicated region fallthrough
CT: control target
= control target key end

     0   :  { %s797_s18 = smov 0   ;;  %s871_s0 = inlined_call_operand.vmem [shape: bf16[2,18,64], index: 0, kind: input, shape index: {}]   ;;  %s872_s1 = inlined_call_operand.vmem [shape: bf16[3,64,128], index: 1, kind: input, shape index: {}]   ;;  %s873_s2 = inlined_call_operand.vmem [shape: f32[1,128], index: 2, kind: input, shape index: {}]   ;;  %s874_s3 = inlined_call_operand.vmem [shape: f32[2,16,128], index: 3, kind: output, shape index: {0}]   ;;  %s875_s4 = inlined_call_operand.vmem [shape: f32[2,1,128], index: 4, kind: output, shape index: {1}]   ;;  %s876_s5 = inlined_call_operand.vmem [shape: f32[2,1,128], index: 5, kind: output, shape index: {2}]  }
   0x1 LB: > { %s636_s19 = sadd.s32 4294967295, %s763_s18   ;;  %p640_p0 = scmp.ge.s32.totalorder %s763_s18, 1  ;;  %s763_s18 = sphi %s797_s18, %s16_s18  }
   0x2   : > { %p192_p1 = scmp.lt.s32.totalorder %s763_s18, 3 }
   0x4   : > { %p193_p2 = pnand %p640_p0, %p192_p1 }
   0x5   : > { %v743_v0 = vld [vmem:[%s872_s1 + $0x20] sm:$0xff] (!%p193_p2)   ;;  %v765_v1 = vmov (!%p193_p2), 0.0   ;;  %v745_v3 = vld [vmem:[%s872_s1 + $0x28] sm:$0xff] (!%p193_p2)   ;;  %vm766_vm0 = vmmov (!%p193_p2), 0   ;;  %p226_p3 = scmp.lt.s32.totalorder (!%p193_p2), %s636_s19, 1  ;;  %v747_v5 = vld [vmem:[%s872_s1 + $0x30] sm:$0xff] (!%p193_p2)  }
   0x6   : > { %196 = sbr.rel (%p193_p2) target bundleno = 276 (0x114), region = 32  ;;  %696 = vmatprep.subr.bf16.mxu0 (!%p193_p2), %v765_v1  ;;  %708 = vmatprep.subr.bf16.mxu1 (!%p193_p2), %v765_v1  ;;  %v744_v2 = vld [vmem:[%s872_s1] sm:$0xff] (!%p193_p2)   ;;  %v746_v4 = vld [vmem:[%s872_s1 + $0x8] sm:$0xff] (!%p193_p2)   ;;  %v748_v6 = vld [vmem:[%s872_s1 + $0x10] sm:$0xff] (!%p193_p2)   ;;  %vm268_vm1 = vsmask.f32 (!%p193_p2), 7424 }
   0x7   : > { %697 = vmatpush3.bf16.msra.mxu0 (!%p193_p2), %v743_v0  ;;  %704 = vmatprep.mubr.msk.bf16.mxu0 (!%p193_p2), %vm766_vm0, %v765_v1  ;;  %v749_v7 = vld [vmem:[%s872_s1 + $0x38] sm:$0xff] (!%p193_p2)   ;;  %vm305_vm2 = vcmask (!%p193_p2), 523264   ;;  %v753_v17 = vld [vmem:[%s872_s1 + $0x40] sm:$0xff] (!%p193_p2)   ;;  %v754_v19 = vld [vmem:[%s872_s1 + $0x48] sm:$0xff] (!%p193_p2)   ;;  %vm428_vm3 = vcmask (!%p193_p2), 1046528  }
   0x8   : > { %709 = vmatpush3.bf16.msra.mxu1 (!%p193_p2), %v744_v2  ;;  %698 = vmatprep.subr.bf16.mxu0 (!%p193_p2), %v765_v1  ;;  %v750_v10 = vld [vmem:[%s872_s1 + $0x18] sm:$0xff] (!%p193_p2)   ;;  %v755_v20 = vld [vmem:[%s872_s1 + $0x50] sm:$0xff] (!%p193_p2)   ;;  %v677_v36 = vld [vmem:[%s873_s2] ss:$0 sm:$0xff] (!%p193_p2) }
   0x9   : > { %710 = vmatprep.subr.bf16.mxu1 (!%p193_p2), %v765_v1  ;;  %716 = vmatprep.mubr.msk.bf16.mxu1 (!%p193_p2), %vm766_vm0, %v765_v1  ;;  %v756_v21 = vld [vmem:[%s872_s1 + $0x58] sm:$0xff] (!%p193_p2)  }
   0xb   : > { %699 = vmatpush3.bf16.msra.mxu0 (!%p193_p2), %v745_v3 }
   0xc   : > { %711 = vmatpush3.bf16.msra.mxu1 (!%p193_p2), %v746_v4  ;;  %700 = vmatprep.subr.bf16.mxu0 (!%p193_p2), %v765_v1 }
   0xd   : > { %s878_s19 = smov (!%p226_p3, %s636_s19), 1  ;;  %712 = vmatprep.subr.bf16.mxu1 %v765_v1 }
   0xe   : > { %s732_s30 = smul.u32 12, %s878_s19  ;;  %s680_s25 = sshll.u32 %s878_s19, 4 }
   0xf   : > { %701 = vmatpush3.bf16.msra.mxu0 %v747_v5  ;;  %s238_s8 = scalar_lea.vmem %s875_s4, %s878_s19  ;;  %s241_s11 = scalar_lea.vmem %s876_s5, %s878_s19 }
  0x10   : > { %s230_s10 = scalar_lea.vmem %s871_s0, %s732_s30  ;;  %713 = vmatpush3.bf16.msra.mxu1 %v748_v6  ;;  %702 = vmatprep.subr.bf16.mxu0 %v765_v1  ;;  %s235_s30 = scalar_lea.vmem %s874_s3, %s680_s25 }
  0x11   : > { %v751_v8 = vld [vmem:[%s230_s10] sm:$0xff]   ;;  %v752_v9 = vld [vmem:[%s230_s10 + $0x8] ss:$0 sps:$4 sm:$0x11]   ;;  %714 = vmatprep.subr.bf16.mxu1 %v765_v1 }
  0x12   : > { %v270_v11 = vshrl.u32 %v751_v8, 16  ;;  %v272_v12 = vshll.u32 %v751_v8, 16  ;;  %v277_v13 = vshll.u32 %v752_v9, 16  ;;  %v429_v22 = vrot.slane %v751_v8, 1 }
  0x13   : > { %703 = vmatpush3.bf16.msra.mxu0 %v749_v7  ;;  %v430_v23 = vrot.slane %v752_v9, 1 }
  0x14   : > { %v274_v14 = vrot.slane %v272_v12, 1  ;;  %v279_v15 = vrot.slane %v277_v13, 1  ;;  %715 = vmatpush3.bf16.msra.mxu1 %v750_v10  ;;  %720 = vmatprep.subr.bf16.mxu0 %v765_v1 }
  0x15   : > { %v431_v24 = vsel %vm428_vm3, %v429_v22, %v430_v23 }
  0x16   : > { %v275_v16 = vor.u32 %v274_v14, %v270_v11 }
  0x17   : > { %717 = vmatmul.mubr.msk.bf16.vlgmr.msra.gmra.mrb[0].mxu1 %vm305_vm2, %v751_v8 }
  0x18   : > { %v280_v18 = vsel %vm268_vm1, %v275_v16, %v279_v15 }
  0x19   : > { %705 = vmatmul.mubr.msk.bf16.vlgmr.msra.gmra.mrb[0].mxu0 %vm305_vm2, %v280_v18 }
  0x1a   : > { %721 = vmatpush3.bf16.msra.mxu0 %v753_v17  ;;  %728 = vmatprep.mubr.msk.bf16.mxu0 %vm766_vm0, %v765_v1 }
  0x1b   : > { %722 = vmatprep.subr.bf16.mxu0 %v765_v1 }
  0x1e   : > { %723 = vmatpush3.bf16.msra.mxu0 %v754_v19 }
  0x1f   : > { %724 = vmatprep.subr.bf16.mxu0 %v765_v1 }
  0x22   : > { %725 = vmatpush3.bf16.msra.mxu0 %v755_v20 }
  0x23   : > { %726 = vmatprep.subr.bf16.mxu0 %v765_v1 }
  0x26   : > { %727 = vmatpush3.bf16.msra.mxu0 %v756_v21 }
  0x29   : > { %729 = vmatmul.mubr.msk.bf16.vlgmr.msra.gmra.mrb[4].mxu0 %vm305_vm2, %v431_v24 }
  0xea   : > { %v410_v25 = vpop.f32.mrb[0].mxu1 }
  0xeb   : > { %v718_v27 = vpop.f32.mrb[1].mxu1 }
  0xec   : > { %v343_v26 = vpop.f32.mrb[0].mxu0  ;;  %v413_v30 = vpop.f32.mrb[2].mxu1 }
  0xed   : > { %v411_v28 = vadd.f32 %v410_v25, %v343_v26  ;;  %v706_v29 = vpop.f32.mrb[1].mxu0  ;;  %v719_v32 = vpop.f32.mrb[3].mxu1 }
  0xee   : > { %v346_v31 = vpop.f32.mrb[2].mxu0 }
  0xef   : > { %v414_v33 = vadd.f32 %v413_v30, %v346_v31  ;;  %v707_v34 = vpop.f32.mrb[3].mxu0 }
  0xfc   : > { %v493_v35 = vpop.f32.mrb[4].mxu0 }
  0xfd   : > { %v500_v37 = vadd.f32 %v493_v35, %v411_v28  ;;  %v730_v38 = vpop.f32.mrb[5].mxu0 }
  0xfe   : > { %v496_v39 = vpop.f32.mrb[6].mxu0 }
  0xff   : > { %v509_v40 = vadd.f32 %v677_v36, %v500_v37  ;;  %v501_v41 = vadd.f32 %v496_v39, %v414_v33  ;;  %v731_v42 = vpop.f32.mrb[7].mxu0 }
 0x101   : > { %511 = vst [vmem:[%s235_s30] sm:$0xff] %v509_v40  ;;  %v510_v43 = vadd.f32 %v677_v36, %v501_v41  ;;  %v521_v44 = vmul.f32 %v509_v40, %v509_v40 }
 0x103   : > { %512 = vst [vmem:[%s235_s30 + $0x8] sm:$0xff] %v510_v43  ;;  %v513_v45 = vadd.f32 %v510_v43, %v509_v40  ;;  %v522_v46 = vmul.f32 %v510_v43, %v510_v43 }
 0x105   : > { %v514_v47 = vrot.slane %v513_v45, 4  ;;  %v523_v48 = vadd.f32 %v522_v46, %v521_v44 }
 0x107   : > { %v515_v49 = vadd.f32 %v514_v47, %v513_v45  ;;  %v524_v50 = vrot.slane %v523_v48, 4 }
 0x109   : > { %v516_v51 = vrot.slane %v515_v49, 2  ;;  %v525_v52 = vadd.f32 %v524_v50, %v523_v48 }
 0x10b   : > { %v517_v53 = vadd.f32 %v516_v51, %v515_v49  ;;  %v526_v54 = vrot.slane %v525_v52, 2 }
 0x10d   : > { %v518_v55 = vrot.slane %v517_v53, 1  ;;  %v527_v56 = vadd.f32 %v526_v54, %v525_v52 }
 0x10f   : > { %v519_v57 = vadd.f32 %v518_v55, %v517_v53  ;;  %v528_v58 = vrot.slane %v527_v56, 1 }
 0x111   : > { %520 = vst [vmem:[%s238_s8] sm:$0x1] %v519_v57  ;;  %v529_v59 = vadd.f32 %v528_v58, %v527_v56 }
 0x113   : > { %530 = vst [vmem:[%s241_s11] sm:$0x1] %v529_v59 }
 0x114 PF: > { %s16_s18 = sadd.s32 1, %s763_s18  }
 0x115   : > { %p13_p4 = scmp.ge.s32.totalorder %s16_s18, 4  }
 0x117   :  { %15 = sbr.rel (!%p13_p4) target bundleno = 1 (0x1), region = 88 }

// kernel: res_layer_2d.4
= control target key start
LH: loop header
LB: loop body
LE: loop exit
PB: predicated region body
PF: predicated region fallthrough
CT: control target
= control target key end

     0   :  { %s1057_s24 = smov 0   ;;  %s1200_s0 = inlined_call_operand.vmem [shape: f32[2,16,128], index: 0, kind: input, shape index: {}]   ;;  %s1201_s1 = inlined_call_operand.vmem [shape: f32[1,128], index: 1, kind: input, shape index: {}]   ;;  %s1202_s2 = inlined_call_operand.vmem [shape: f32[1,128], index: 2, kind: input, shape index: {}]   ;;  %s1203_s3 = inlined_call_operand.vmem [shape: bf16[3,128,128], index: 3, kind: input, shape index: {}]   ;;  %s1204_s4 = inlined_call_operand.vmem [shape: f32[1,128], index: 4, kind: input, shape index: {}]   ;;  %s1205_s5 = inlined_call_operand.vmem [shape: f32[2,16,128], index: 5, kind: output, shape index: {0}]   ;;  %s1206_s6 = inlined_call_operand.vmem [shape: f32[2,1,128], index: 6, kind: output, shape index: {1}]   ;;  %s1207_s7 = inlined_call_operand.vmem [shape: f32[2,1,128], index: 7, kind: output, shape index: {2}]  }
   0x1 LB: > { %s808_s25 = sadd.s32 4294967295, %s1012_s24   ;;  %p812_p0 = scmp.ge.s32.totalorder %s1012_s24, 1  ;;  %s1012_s24 = sphi %s1057_s24, %s18_s24  }
   0x2   : > { %p242_p1 = scmp.lt.s32.totalorder %s1012_s24, 3 }
   0x4   : > { %p243_p2 = pnand %p812_p0, %p242_p1 }
   0x5   : > { %v982_v0 = vld [vmem:[%s1203_s3 + $0x40] sm:$0xff] (!%p243_p2)   ;;  %v1014_v1 = vmov (!%p243_p2), 0.0   ;;  %v984_v3 = vld [vmem:[%s1203_s3 + $0x48] sm:$0xff] (!%p243_p2)   ;;  %vm1015_vm0 = vmmov (!%p243_p2), 0   ;;  %p280_p3 = scmp.lt.s32.totalorder (!%p243_p2), %s808_s25, 1  ;;  %v986_v5 = vld [vmem:[%s1203_s3 + $0x50] sm:$0xff] (!%p243_p2)  }
   0x6   : > { %246 = sbr.rel (%p243_p2) target bundleno = 305 (0x131), region = 40  ;;  %911 = vmatprep.subr.bf16.mxu0 (!%p243_p2), %v1014_v1  ;;  %931 = vmatprep.subr.bf16.mxu1 (!%p243_p2), %v1014_v1  ;;  %v983_v2 = vld [vmem:[%s1203_s3] sm:$0xff] (!%p243_p2)   ;;  %v985_v4 = vld [vmem:[%s1203_s3 + $0x8] sm:$0xff] (!%p243_p2)   ;;  %v987_v6 = vld [vmem:[%s1203_s3 + $0x10] sm:$0xff] (!%p243_p2)   ;;  %vm323_vm1 = vcmask (!%p243_p2), 1040384   ;;  %vm1016_vm3 = vmmov (!%p243_p2), 1  }
   0x7   : > { %912 = vmatpush3.bf16.msra.mxu0 (!%p243_p2), %v982_v0  ;;  %927 = vmatprep.mubr.msk.bf16.mxu0 (!%p243_p2), %vm1015_vm0, %v1014_v1  ;;  %v988_v7 = vld [vmem:[%s1203_s3 + $0x58] sm:$0xff] (!%p243_p2)   ;;  %v990_v9 = vld [vmem:[%s1203_s3 + $0x60] sm:$0xff] (!%p243_p2)   ;;  %v992_v17 = vld [vmem:[%s1203_s3 + $0x68] sm:$0xff] (!%p243_p2)   ;;  %vm367_vm5 = vsmask.f32 (!%p243_p2), 7424  ;;  %vm578_vm6 = vcmask (!%p243_p2), 1046528  }
   0x8   : > { %932 = vmatpush3.bf16.msra.mxu1 (!%p243_p2), %v983_v2  ;;  %913 = vmatprep.subr.bf16.mxu0 (!%p243_p2), %v1014_v1  ;;  %v989_v8 = vld [vmem:[%s1203_s3 + $0x18] sm:$0xff] (!%p243_p2)   ;;  %v991_v10 = vld [vmem:[%s1203_s3 + $0x20] sm:$0xff] (!%p243_p2)   ;;  %v993_v18 = vld [vmem:[%s1203_s3 + $0x28] sm:$0xff] (!%p243_p2)  }
   0x9   : > { %933 = vmatprep.subr.bf16.mxu1 (!%p243_p2), %v1014_v1  ;;  %947 = vmatprep.mubr.msk.bf16.mxu1 (!%p243_p2), %vm1015_vm0, %v1014_v1  ;;  %v817_v13 = vld [vmem:[%s1201_s1] ss:$0 sm:$0xff] (!%p243_p2)  ;;  %v994_v23 = vld [vmem:[%s1203_s3 + $0x70] sm:$0xff] (!%p243_p2)   ;;  %v996_v29 = vld [vmem:[%s1203_s3 + $0x78] sm:$0xff] (!%p243_p2)  }
   0xa   : > { %v818_v16 = vld [vmem:[%s1202_s2] ss:$0 sm:$0xff] (!%p243_p2)  ;;  %v995_v24 = vld [vmem:[%s1203_s3 + $0x30] sm:$0xff] (!%p243_p2)   ;;  %v997_v30 = vld [vmem:[%s1203_s3 + $0x38] sm:$0xff] (!%p243_p2)  }
   0xb   : > { %914 = vmatpush3.bf16.msra.mxu0 (!%p243_p2), %v984_v3  ;;  %vm851_vm2 = vmneg (!%p243_p2), %vm323_vm1  ;;  %v998_v43 = vld [vmem:[%s1203_s3 + $0x80] sm:$0xff] (!%p243_p2)   ;;  %v999_v45 = vld [vmem:[%s1203_s3 + $0x88] sm:$0xff] (!%p243_p2)  }
   0xc   : > { %934 = vmatpush3.bf16.msra.mxu1 (!%p243_p2), %v985_v4  ;;  %915 = vmatprep.subr.bf16.mxu0 (!%p243_p2), %v1014_v1  ;;  %vm852_vm4 = vmpackc.low (!%p243_p2), %vm1016_vm3, %vm851_vm2  ;;  %v1000_v46 = vld [vmem:[%s1203_s3 + $0x90] sm:$0xff] (!%p243_p2)   ;;  %v1001_v47 = vld [vmem:[%s1203_s3 + $0x98] sm:$0xff] (!%p243_p2)  }
   0xd   : > { %s1209_s25 = smov (!%p280_p3, %s808_s25), 1  ;;  %935 = vmatprep.subr.bf16.mxu1 %v1014_v1  ;;  %v1002_v48 = vld [vmem:[%s1203_s3 + $0xa0] sm:$0xff]   ;;  %v1003_v49 = vld [vmem:[%s1203_s3 + $0xa8] sm:$0xff]   ;;  %v1004_v50 = vld [vmem:[%s1203_s3 + $0xb0] sm:$0xff]  }
   0xe   : > { %s882_s17 = sshll.u32 %s1209_s25, 4  ;;  %v1005_v51 = vld [vmem:[%s1203_s3 + $0xb8] sm:$0xff]   ;;  %s292_s27 = scalar_lea.vmem %s1206_s6, %s1209_s25 }
   0xf   : > { %916 = vmatpush3.bf16.msra.mxu0 %v986_v5  ;;  %s284_s22 = scalar_lea.vmem %s1200_s0, %s882_s17  ;;  %s289_s23 = scalar_lea.vmem %s1205_s5, %s882_s17 }
  0x10   : > { %936 = vmatpush3.bf16.msra.mxu1 %v987_v6  ;;  %917 = vmatprep.subr.bf16.mxu0 %v1014_v1  ;;  %v297_v11 = vld [vmem:[%s284_s22] sm:$0xff]  ;;  %v298_v12 = vld [vmem:[%s284_s22 + $0x8] sm:$0xff]  ;;  %s295_s30 = scalar_lea.vmem %s1207_s7, %s1209_s25 }
  0x11   : > { %937 = vmatprep.subr.bf16.mxu1 %v1014_v1  ;;  %v306_v14 = vmul.f32 %v817_v13, %v297_v11  ;;  %v307_v15 = vmul.f32 %v817_v13, %v298_v12 }
  0x13   : > { %918 = vmatpush3.bf16.msra.mxu0 %v988_v7  ;;  %v315_v19 = vadd.f32 %v818_v16, %v306_v14  ;;  %v316_v20 = vadd.f32 %v818_v16, %v307_v15 }
  0x14   : > { %938 = vmatpush3.bf16.msra.mxu1 %v989_v8  ;;  %919 = vmatprep.subr.bf16.mxu0 %v1014_v1 }
  0x15   : > { %939 = vmatprep.subr.bf16.mxu1 %v1014_v1  ;;  %v317_v21 = vmul.f32 0.01, %v315_v19  ;;  %v318_v22 = vmul.f32 0.01, %v316_v20 }
  0x17   : > { %920 = vmatpush3.bf16.msra.mxu0 %v990_v9  ;;  %v319_v25 = vmax.f32 %v315_v19, %v317_v21  ;;  %v320_v26 = vmax.f32 %v316_v20, %v318_v22 }
  0x18   : > { %940 = vmatpush3.bf16.msra.mxu1 %v991_v10  ;;  %921 = vmatprep.subr.bf16.mxu0 %v1014_v1 }
  0x19   : > { %941 = vmatprep.subr.bf16.mxu1 %v1014_v1  ;;  %v324_v27 = vrot.slane %v319_v25, 7  ;;  %v325_v28 = vrot.slane %v320_v26, 7 }
  0x1b   : > { %922 = vmatpush3.bf16.msra.mxu0 %v992_v17  ;;  %v326_v31 = vsel %vm323_vm1, %v324_v27, %v325_v28  ;;  %v330_v32 = vsel %vm323_vm1, 0.0, %v324_v27  ;;  %v331_v33 = vsel %vm323_vm1, %v325_v28, 0.0 }
  0x1c   : > { %942 = vmatpush3.bf16.msra.mxu1 %v993_v18  ;;  %923 = vmatprep.subr.bf16.mxu0 %v1014_v1  ;;  %v332_v34 = vpack.c.bf16 %v326_v31, %v330_v32  ;;  %v349_v35 = vpack.c.bf16 %v331_v33, %v331_v33  ;;  %v853_v39 = vpack.c.bf16 %v326_v31, %v324_v27 }
  0x1d   : > { %943 = vmatprep.subr.bf16.mxu1 %v1014_v1 }
  0x1e   : > { %v369_v36 = vshrl.u32 %v332_v34, 16  ;;  %v371_v37 = vshll.u32 %v332_v34, 16  ;;  %v376_v38 = vshll.u32 %v349_v35, 16  ;;  %v579_v52 = vrot.slane %v332_v34, 1 }
  0x1f   : > { %924 = vmatpush3.bf16.msra.mxu0 %v994_v23  ;;  %v580_v53 = vrot.slane %v349_v35, 1 }
  0x20   : > { %944 = vmatpush3.bf16.msra.mxu1 %v995_v24  ;;  %925 = vmatprep.subr.bf16.mxu0 %v1014_v1  ;;  %v373_v40 = vrot.slane %v371_v37, 1  ;;  %v378_v41 = vrot.slane %v376_v38, 1 }
  0x21   : > { %945 = vmatprep.subr.bf16.mxu1 %v1014_v1  ;;  %v581_v54 = vsel %vm578_vm6, %v579_v52, %v580_v53 }
  0x22   : > { %v374_v42 = vor.u32 %v373_v40, %v369_v36 }
  0x23   : > { %926 = vmatpush3.bf16.msra.mxu0 %v996_v29 }
  0x24   : > { %946 = vmatpush3.bf16.msra.mxu1 %v997_v30  ;;  %951 = vmatprep.subr.bf16.mxu0 %v1014_v1  ;;  %v379_v44 = vsel %vm367_vm5, %v374_v42, %v378_v41 }
  0x26   : > { %928 = vmatmul.mubr.bf16.vlgmr.msra.gmra.mrb[0].mxu0 %v379_v44 }
  0x27   : > { %948 = vmatmul.mubr.msk.bf16.vlgmr.msra.gmra.mrb[0].mxu1 %vm852_vm4, %v853_v39  ;;  %952 = vmatpush3.bf16.msra.mxu0 %v998_v43 }
  0x28   : > { %967 = vmatprep.mubr.msk.bf16.mxu0 %vm1015_vm0, %v1014_v1  ;;  %953 = vmatprep.subr.bf16.mxu0 %v1014_v1 }
  0x2b   : > { %954 = vmatpush3.bf16.msra.mxu0 %v999_v45 }
  0x2c   : > { %955 = vmatprep.subr.bf16.mxu0 %v1014_v1 }
  0x2f   : > { %956 = vmatpush3.bf16.msra.mxu0 %v1000_v46 }
  0x30   : > { %957 = vmatprep.subr.bf16.mxu0 %v1014_v1 }
  0x33   : > { %958 = vmatpush3.bf16.msra.mxu0 %v1001_v47 }
  0x34   : > { %959 = vmatprep.subr.bf16.mxu0 %v1014_v1 }
  0x37   : > { %960 = vmatpush3.bf16.msra.mxu0 %v1002_v48 }
  0x38   : > { %961 = vmatprep.subr.bf16.mxu0 %v1014_v1 }
  0x3b   : > { %962 = vmatpush3.bf16.msra.mxu0 %v1003_v49 }
  0x3c   : > { %963 = vmatprep.subr.bf16.mxu0 %v1014_v1 }
  0x3f   : > { %964 = vmatpush3.bf16.msra.mxu0 %v1004_v50 }
  0x40   : > { %965 = vmatprep.subr.bf16.mxu0 %v1014_v1  ;;  %v879_v1 = vld [vmem:[%s1204_s4] ss:$0 sm:$0xff] }
  0x43   : > { %966 = vmatpush3.bf16.msra.mxu0 %v1005_v51 }
  0x46   : > { %968 = vmatmul.mubr.bf16.vlgmr.msra.gmra.mrb[4].mxu0 %v581_v54 }
  0xf9   : > { %v463_v58 = vpop.f32.mrb[0].mxu0 }
  0xfa   : > { %v552_v55 = vpop.f32.mrb[0].mxu1  ;;  %v929_v61 = vpop.f32.mrb[1].mxu0 }
  0xfb   : > { %v949_v56 = vpop.f32.mrb[1].mxu1  ;;  %v553_v60 = vadd.f32 %v552_v55, %v463_v58  ;;  %v466_v62 = vpop.f32.mrb[2].mxu0 }
  0xfc   : > { %v555_v57 = vpop.f32.mrb[2].mxu1  ;;  %v930_v0 = vpop.f32.mrb[3].mxu0 }
  0xfd   : > { %v950_v59 = vpop.f32.mrb[3].mxu1  ;;  %v556_v63 = vadd.f32 %v555_v57, %v466_v62 }
 0x119   : > { %v665_v2 = vpop.f32.mrb[4].mxu0 }
 0x11a   : > { %v672_v3 = vadd.f32 %v665_v2, %v553_v60  ;;  %v969_v4 = vpop.f32.mrb[5].mxu0 }
 0x11b   : > { %v668_v5 = vpop.f32.mrb[6].mxu0 }
 0x11c   : > { %v681_v6 = vadd.f32 %v879_v1, %v672_v3  ;;  %v673_v7 = vadd.f32 %v668_v5, %v556_v63  ;;  %v970_v8 = vpop.f32.mrb[7].mxu0 }
 0x11e   : > { %683 = vst [vmem:[%s289_s23] sm:$0xff] %v681_v6  ;;  %v682_v9 = vadd.f32 %v879_v1, %v673_v7  ;;  %v693_v10 = vmul.f32 %v681_v6, %v681_v6 }
 0x120   : > { %684 = vst [vmem:[%s289_s23 + $0x8] sm:$0xff] %v682_v9  ;;  %v685_v11 = vadd.f32 %v682_v9, %v681_v6  ;;  %v694_v12 = vmul.f32 %v682_v9, %v682_v9 }
 0x122   : > { %v686_v13 = vrot.slane %v685_v11, 4  ;;  %v695_v14 = vadd.f32 %v694_v12, %v693_v10 }
 0x124   : > { %v687_v15 = vadd.f32 %v686_v13, %v685_v11  ;;  %v696_v16 = vrot.slane %v695_v14, 4 }
 0x126   : > { %v688_v17 = vrot.slane %v687_v15, 2  ;;  %v697_v18 = vadd.f32 %v696_v16, %v695_v14 }
 0x128   : > { %v689_v19 = vadd.f32 %v688_v17, %v687_v15  ;;  %v698_v20 = vrot.slane %v697_v18, 2 }
 0x12a   : > { %v690_v21 = vrot.slane %v689_v19, 1  ;;  %v699_v22 = vadd.f32 %v698_v20, %v697_v18 }
 0x12c   : > { %v691_v23 = vadd.f32 %v690_v21, %v689_v19  ;;  %v700_v24 = vrot.slane %v699_v22, 1 }
 0x12e   : > { %692 = vst [vmem:[%s292_s27] sm:$0x1] %v691_v23  ;;  %v701_v25 = vadd.f32 %v700_v24, %v699_v22 }
 0x130   : > { %702 = vst [vmem:[%s295_s30] sm:$0x1] %v701_v25 }
 0x131 PF: > { %s18_s24 = sadd.s32 1, %s1012_s24  }
 0x132   : > { %p15_p4 = scmp.ge.s32.totalorder %s18_s24, 4  }
 0x134   :  { %17 = sbr.rel (!%p15_p4) target bundleno = 1 (0x1), region = 96 }

// kernel: res_layer_2d.5
= control target key start
LH: loop header
LB: loop body
LE: loop exit
PB: predicated region body
PF: predicated region fallthrough
CT: control target
= control target key end

     0   :  { %s303_s12 = smov 0   ;;  %s320_s0 = inlined_call_operand.vmem [shape: f32[2,16,128], index: 0, kind: input, shape index: {}]   ;;  %s321_s1 = inlined_call_operand.vmem [shape: f32[1,128], index: 1, kind: input, shape index: {}]   ;;  %s322_s2 = inlined_call_operand.vmem [shape: f32[1,128], index: 2, kind: input, shape index: {}]   ;;  %s323_s3 = inlined_call_operand.vmem [shape: f32[2,16,128], index: 3, kind: output, shape index: {}]  }
   0x1 LB: > { %s252_s13 = sadd.s32 4294967295, %s281_s12   ;;  %p256_p0 = scmp.ge.s32.totalorder %s281_s12, 1  ;;  %s281_s12 = sphi %s303_s12, %s13_s12  }
   0x2   : > { %p137_p1 = scmp.lt.s32.totalorder %s281_s12, 3 }
   0x4   : > { %p138_p2 = pnand %p256_p0, %p137_p1 }
   0x5   : > { %p161_p3 = scmp.lt.s32.totalorder (!%p138_p2), %s252_s13, 1  ;;  %v261_v0 = vld [vmem:[%s321_s1] ss:$0 sm:$0xff] (!%p138_p2) }
   0x6   : > { %141 = sbr.rel (%p138_p2) target bundleno = 26 (0x1a), region = 32  ;;  %v262_v3 = vld [vmem:[%s322_s2] ss:$0 sm:$0xff] (!%p138_p2) }
   0xd   : > { %s325_s13 = smov (!%p161_p3, %s252_s13), 1 }
   0xe   : > { %s265_s14 = sshll.u32 %s325_s13, 4 }
   0xf   : > { %s165_s19 = scalar_lea.vmem %s320_s0, %s265_s14  ;;  %s170_s24 = scalar_lea.vmem %s323_s3, %s265_s14 }
  0x10   : > { %v171_v1 = vld [vmem:[%s165_s19] sm:$0xff]  ;;  %v172_v2 = vld [vmem:[%s165_s19 + $0x8] sm:$0xff] }
  0x11   : > { %v180_v4 = vmul.f32 %v261_v0, %v171_v1  ;;  %v181_v5 = vmul.f32 %v261_v0, %v172_v2 }
  0x13   : > { %v189_v6 = vadd.f32 %v262_v3, %v180_v4  ;;  %v190_v7 = vadd.f32 %v262_v3, %v181_v5 }
  0x15   : > { %v191_v8 = vmul.f32 0.01, %v189_v6  ;;  %v192_v9 = vmul.f32 0.01, %v190_v7 }
  0x17   : > { %v193_v10 = vmax.f32 %v189_v6, %v191_v8  ;;  %v194_v11 = vmax.f32 %v190_v7, %v192_v9 }
  0x19   : > { %195 = vst [vmem:[%s170_s24] sm:$0xff] %v193_v10  ;;  %196 = vst [vmem:[%s170_s24 + $0x8] sm:$0xff] %v194_v11 }
  0x1a PF: > { %s13_s12 = sadd.s32 1, %s281_s12  }
  0x1b   : > { %p10_p4 = scmp.ge.s32.totalorder %s13_s12, 4  }
  0x1d   :  { %12 = sbr.rel (!%p10_p4) target bundleno = 1 (0x1), region = 62 }

</bundles_post_ra>
